<compile_context>
chip_gen: v7x
topology: tpu7x:2x2x1
jax: 0.10.0
libtpu: 0.0.40
codegen_flags: <defaults>
</compile_context>

<pallas_src>
import functools

import jax
import jax.numpy as jnp
from jax.experimental import pallas as pl
from jax.experimental.pallas import tpu as pltpu


_TARGET_BLOCK_BYTES = 2 << 20   # ~2 MiB streamed x block
_VMEM_BUDGET_BYTES = 40 << 20   # live pipeline VMEM budget (safe on v7x: 64 MiB phys)
_VMEM_LIMIT_CAP = 48 << 20      # never ask Mosaic for more scoped VMEM than this


def fb_unit_kernel(w_ref, b_ref, x_ref, o_ref):
    # w_ref: (S, S)       conv weight, kernel dim squeezed
    # b_ref: (S, 1)       conv bias, broadcast over the lane axis
    # x_ref: (S, T)       lane-dense chunk of the input
    # o_ref: (S, T)
    out = jnp.dot(w_ref[...], x_ref[...],
                  preferred_element_type=jnp.float32)     # MXU, f32 accumulate
    o_ref[...] = (out + b_ref[...]).astype(o_ref.dtype)


def _round_down_128(v):
    return (v // 128) * 128


def _auto_lane_tile(n_cols, s, elem_bytes, other_steps):
    """Lane-axis tile: lane-dense, ~2 MiB blocks, VMEM-bounded, >=2 grid steps."""
    per_col = max(s * elem_bytes, 1)
    # live VMEM ~= 2 x-blocks + 2 out-blocks (double buffering) + tiny W/bias
    cap = max(128, _round_down_128(_VMEM_BUDGET_BYTES // (4 * per_col)))
    tgt = max(128, _round_down_128(_TARGET_BLOCK_BYTES // per_col))
    tile = min(cap, tgt)
    if n_cols <= tile:
        if other_steps <= 1 and n_cols >= 256:
            # Split so v7x's two TensorCores both get work.
            tile = max(128, _round_down_128(n_cols // 2))
        else:
            tile = n_cols        # single full-width block (no 128 constraint)
    return tile


def _vmem_limit(s, tile, elem_bytes):
    needed = (4 * s * tile + 2 * s * s + 2 * s) * elem_bytes
    return int(min(_VMEM_LIMIT_CAP, max(needed + (8 << 20), 32 << 20)))


@functools.partial(jax.jit, static_argnames=("lane_tile",))
def fb_unit_forward(x, weight, bias, *, lane_tile=None):
    """nn.Conv1d(seq_len, seq_len, kernel_size=1) forward.

    x:      (B, S, L) float32, NCW layout like the PyTorch module.
    weight: (S, S)    (out_channels, in_channels), kernel dim squeezed.
    bias:   (S,)
    lane_tile: optional static override of the lane-axis tile (multiple of 128
               when it does not cover the whole axis).
    returns (B, S, L)
    """
    B, S, L = x.shape
    elem = jnp.dtype(x.dtype).itemsize
    bias2d = bias.reshape(S, 1)

    if L >= 128:
        # ---- Main path: tile the original (B, S, L) directly (no transposes).
        tile = lane_tile if lane_tile is not None else _auto_lane_tile(L, S, elem, B)
        tile = min(tile, L)
        n_l_blocks = pl.cdiv(L, tile)        # ragged last block is fine (column-local)
        return pl.pallas_call(
            fb_unit_kernel,
            out_shape=jax.ShapeDtypeStruct((B, S, L), x.dtype),
            grid_spec=pltpu.PrefetchScalarGridSpec(
                num_scalar_prefetch=0,
                grid=(B, n_l_blocks),
                in_specs=[
                    pl.BlockSpec((S, S), lambda b, l: (0, 0)),   # weight, resident
                    pl.BlockSpec((S, 1), lambda b, l: (0, 0)),   # bias,   resident
                    pl.BlockSpec((pl.Squeezed(), S, tile), lambda b, l: (b, 0, l)),
                ],
                out_specs=pl.BlockSpec((pl.Squeezed(), S, tile),
                                       lambda b, l: (b, 0, l)),
            ),
            compiler_params=pltpu.CompilerParams(
                dimension_semantics=("parallel", "parallel"),
                vmem_limit_bytes=_vmem_limit(S, tile, elem),
            ),
        )(weight, bias2d, x)

    # ---- Fallback for lane-sparse L (< 128): fuse batch into the lane axis so
    # stores stay as dense as possible.  The transposes are layout plumbing in
    # XLA; only taken for small L where the extra traffic is negligible.
    N = B * L
    x_flat = jnp.transpose(x, (1, 0, 2)).reshape(S, N)
    tile = lane_tile if lane_tile is not None else _auto_lane_tile(N, S, elem, 1)
    tile = min(tile, N)
    grid = (pl.cdiv(N, tile),)
    out_flat = pl.pallas_call(
        fb_unit_kernel,
        out_shape=jax.ShapeDtypeStruct((S, N), x.dtype),
        grid_spec=pltpu.PrefetchScalarGridSpec(
            num_scalar_prefetch=0,
            grid=grid,
            in_specs=[
                pl.BlockSpec((S, S), lambda n: (0, 0)),
                pl.BlockSpec((S, 1), lambda n: (0, 0)),
                pl.BlockSpec((S, tile), lambda n: (0, n)),
            ],
            out_specs=pl.BlockSpec((S, tile), lambda n: (0, n)),
        ),
        compiler_params=pltpu.CompilerParams(
            dimension_semantics=("parallel",),
            vmem_limit_bytes=_vmem_limit(S, tile, elem),
        ),
    )(weight, bias2d, x_flat)
    return jnp.transpose(out_flat.reshape(S, B, L), (1, 0, 2))


def fb_unit_reference(x, weight, bias):
    # Pure-JAX reference of nn.Conv1d(seq_len, seq_len, kernel_size=1).
    return jnp.einsum("oi,bil->bol", weight, x) + bias[None, :, None]


if __name__ == "__main__":
    key = jax.random.PRNGKey(0)

    def make_params(k, seq_len):
        kw, kb = jax.random.split(k)
        bound = 1.0 / (seq_len ** 0.5)
        w = jax.random.uniform(kw, (seq_len, seq_len), jnp.float32, -bound, bound)
        b = jax.random.uniform(kb, (seq_len,), jnp.float32, -bound, bound)
        return w, b

    cases = [
        # (batch, seq_len, d_model, lane_tile)
        (2, 8, 128, None),   # main path: grid=(2,1), lane-dense full-L block
        (4, 8, 16, None),    # L<128 fallback: fused (S, B*L), single block
        (2, 8, 320, 128),    # forced small tile: grid=(2,3), ragged last L block
        (1, 8, 512, None),   # auto split -> grid=(1,2) so v7x's 2 TCs both work
    ]

    for i, (batch, seq_len, d_model, lane_tile) in enumerate(cases):
        key, kx, kp = jax.random.split(key, 3)
        x = jax.random.normal(kx, (batch, seq_len, d_model), dtype=jnp.float32)
        w, b = make_params(kp, seq_len)

        out = jax.block_until_ready(fb_unit_forward(x, w, b, lane_tile=lane_tile))
        ref = fb_unit_reference(x, w, b)
        assert out.shape == (batch, seq_len, d_model), f"shape mismatch case {i}"
        assert jnp.allclose(out, ref, atol=1e-5, rtol=1e-5), f"mismatch case {i}"

    print("KERNEL_OK")
</pallas_src>

<mosaic_0001>
module attributes {stable_mosaic.version = 11 : i64} {
  func.func @fb_unit_kernel(%arg0: i32, %arg1: i32, %arg2: memref<8x8xf32, #tpu.memory_space<vmem>>, %arg3: memref<8x1xf32, #tpu.memory_space<vmem>>, %arg4: memref<1x8x128xf32, #tpu.memory_space<vmem>>, %arg5: memref<1x8x128xf32, #tpu.memory_space<vmem>>) attributes {dimension_semantics = [#tpu.dimension_semantics<parallel>, #tpu.dimension_semantics<parallel>], iteration_bounds = array<i64: 2, 1>, scalar_prefetch = 0 : i64, scratch_operands = 0 : i64, tpu.core_type = #tpu.core_type<tc>, window_params = [{pipeline_mode = #tpu.pipeline_mode<synchronous>, transform_indices = @transform_0, window_bounds = array<i64: 8, 8>}, {pipeline_mode = #tpu.pipeline_mode<synchronous>, transform_indices = @transform_1, window_bounds = array<i64: 8, 1>}, {transform_indices = @transform_2, window_bounds = array<i64: 1, 8, 128>}, {transform_indices = @transform_3, window_bounds = array<i64: 1, 8, 128>}]} {
    %c0 = arith.constant 0 : index
    %c0_0 = arith.constant 0 : index
    %0 = vector.load %arg2[%c0, %c0_0] : memref<8x8xf32, #tpu.memory_space<vmem>>, vector<8x8xf32>
    %c0_1 = arith.constant 0 : index
    %c0_2 = arith.constant 0 : index
    %c0_3 = arith.constant 0 : index
    %1 = vector.load %arg4[%c0_1, %c0_2, %c0_3] : memref<1x8x128xf32, #tpu.memory_space<vmem>>, vector<1x8x128xf32>
    %2 = vector.shape_cast %1 : vector<1x8x128xf32> to vector<8x128xf32>
    %cst = arith.constant dense<0.000000e+00> : vector<8x128xf32>
    %3 = tpu.matmul %0, %2, %cst {dimension_numbers = #tpu.dot_dimension_numbers<[1], [0], [0], [1], [0, 0, 1, 1], [], []>} : vector<8x8xf32>, vector<8x128xf32>, vector<8x128xf32> -> vector<8x128xf32>
    %c0_4 = arith.constant 0 : index
    %c0_5 = arith.constant 0 : index
    %4 = vector.load %arg3[%c0_4, %c0_5] : memref<8x1xf32, #tpu.memory_space<vmem>>, vector<8x1xf32>
    %5 = vector.broadcast %4 : vector<8x1xf32> to vector<8x128xf32>
    %6 = arith.addf %3, %5 : vector<8x128xf32>
    %c0_6 = arith.constant 0 : index
    %c0_7 = arith.constant 0 : index
    %c0_8 = arith.constant 0 : index
    %7 = vector.load %arg5[%c0_6, %c0_7, %c0_8] : memref<1x8x128xf32, #tpu.memory_space<vmem>>, vector<1x8x128xf32>
    %8 = vector.shape_cast %7 : vector<1x8x128xf32> to vector<8x128xf32>
    %9 = vector.shape_cast %6 : vector<8x128xf32> to vector<1x8x128xf32>
    tpu.vector_store %arg5[%c0_6, %c0_7, %c0_8], %9 {strides = array<i32>} : memref<1x8x128xf32, #tpu.memory_space<vmem>>, vector<1x8x128xf32>,
    return
  }
  func.func @transform_0(%arg0: i32, %arg1: i32) -> (i32, i32) {
    %c0_i32 = arith.constant 0 : i32
    %c0_i32_0 = arith.constant 0 : i32
    %c0_i32_1 = arith.constant 0 : i32
    return %c0_i32, %c0_i32_0 : i32, i32
  }
  func.func @transform_1(%arg0: i32, %arg1: i32) -> (i32, i32) {
    %c0_i32 = arith.constant 0 : i32
    %c0_i32_0 = arith.constant 0 : i32
    %c0_i32_1 = arith.constant 0 : i32
    return %c0_i32, %c0_i32_0 : i32, i32
  }
  func.func @transform_2(%arg0: i32, %arg1: i32) -> (i32, i32, i32) {
    %c0_i32 = arith.constant 0 : i32
    %c0_i32_0 = arith.constant 0 : i32
    return %arg0, %c0_i32, %arg1 : i32, i32, i32
  }
  func.func @transform_3(%arg0: i32, %arg1: i32) -> (i32, i32, i32) {
    %c0_i32 = arith.constant 0 : i32
    %c0_i32_0 = arith.constant 0 : i32
    return %arg0, %c0_i32, %arg1 : i32, i32, i32
  }
}

</mosaic_0001>

<bundles_post_ra>
// kernel: fb_unit_forward.1
= control target key start
LH: loop header
LB: loop body
LE: loop exit
PB: predicated region body
PF: predicated region fallthrough
CT: control target
= control target key end

     0   :  { %8 = vsyncpa [#allocation3], 0  ;;  %s785_s0 = inlined_call_operand.vmem [shape: f32[8,8], index: 0, kind: input, shape index: {}]   ;;  %s786_s1 = inlined_call_operand.vmem [shape: f32[8,1], index: 1, kind: input, shape index: {}]   ;;  %s787_s2 = inlined_call_operand.hbm [shape: f32[2,8,128], index: 2, kind: input, shape index: {}]   ;;  %s788_s3 = inlined_call_operand.hbm [shape: f32[2,8,128], index: 3, kind: output, shape index: {}]  }
   0x1   :  { %10 = vsyncpa [#allocation3 + $0x1], 0 }
   0x2   :  { %11 = vsyncpa [#allocation4], 0 }
   0x3   :  { %13 = vsyncpa [#allocation4 + $0x1], 0  ;;  %s607_s12 = smov 0   ;;  %s609_s13 = smov 0  }
   0x4   :  { %s611_s14 = smov 0   ;;  %s613_s15 = smov 0  }
   0x5   :  { %s615_s16 = smov 0   ;;  %s617_s17 = smov 0  }
   0x6 LB: > { %s381_s18 = sadd.s32 4294967295, %s580_s17   ;;  %s382_s19 = sadd.s32 4294967294, %s580_s17   ;;  %s580_s17 = sphi %s617_s17, %s19_s17   ;;  %s576_s16 = sphi %s615_s16, %s804_s16   ;;  %s572_s15 = sphi %s613_s15, %s803_s15   ;;  %s568_s14 = sphi %s611_s14, %s802_s14   ;;  %s564_s13 = sphi %s609_s13, %s801_s13   ;;  %s560_s12 = sphi %s607_s12, %s800_s12  }
   0x7   : > { %s31_s20 = sadd.s32 1, %s576_s16  ;;  %s82_s21 = sadd.s32 1, %s568_s14 }
   0x8   : > { %p33_p0 = scmp.ge.s32.totalorder %s31_s20, 2  ;;  %p89_p1 = scmp.ne.s32.totalorder %s568_s14, %s564_s13 }
   0x9   : > { %p90_p2 = scmp.eq.s32.totalorder %s580_s17, 0  ;;  %p95_p3 = scmp.ne.s32.totalorder %s564_s13, %s560_s12 }
   0xa   : > { %s806_s20 = smov (%p33_p0, %s31_s20), 0  ;;  %p96_p5 = scmp.eq.s32.totalorder %s381_s18, 0 }
   0xb   : > { %p648_p4 = por %p90_p2, %p89_p1  ;;  %s77_s23 = ssub.s32 %s576_s16, %s806_s20 }
   0xc   : > { %p121_p6 = scmp.eq.s32.totalorder %s381_s18, 1  ;;  %p80_p7 = scmp.eq.s32.totalorder %s77_s23, 0 }
   0xd   : > { %p654_p8 = por %p96_p5, %p95_p3  ;;  %p127_p10 = scmp.eq.s32.totalorder %s382_s19, 1 }
   0xe   : > { %p658_p9 = por %p121_p6, %p89_p1  ;;  %p414_p13 = scmp.lt.s32.totalorder %s580_s17, 2 }
   0xf   : > { %s663_s26 = scalar_select %p80_p7, %s568_s14, %s82_s21  }
  0x10   : > { %s792_s25 = scalar_select %p658_p9, 1, 0 }
  0x11   : > { %p665_p11 = por %p127_p10, %p95_p3  ;;  %s153_s28 = sand.u32 1, %s568_s14  }
  0x12   : > { %s385_s29 = sshll.u32 %s153_s28, 3  ;;  %s386_s30 = sshll.u32 %s576_s16, 7 }
  0x13   : > { %s793_s27 = scalar_select %p665_p11, 1, 0 }
  0x14   : > { %s676_s6 = scalar_lea.hbm %s787_s2, %s386_s30  ;;  %s157_s7 = scalar_lea.vmem [#allocation2], %s385_s29 }
  0x15   : > { %s165_s8 = sshll.u32 %s157_s7, 4  ;;  %p682_p0 = pnand %p414_p13, %p648_p4  ;;  %s678_s8 = int_to_ptr.vmem [resolvable:$true] %s165_s8 }
  0x16   : > { %s154_s10 = scalar_lea.sflag [#allocation3], %s153_s28  ;;  %s468_s11 = scalar_lea.hbm %s676_s6, 128 }
  0x17   : > { %p469_p3 = scmp.ne.s32.totalorder %s676_s6, %s468_s11  ;;  %p470_p5 = pneg %p682_p0 }
  0x18   : > { %s473_s21 = scalar_lea.hbm %s787_s2, 256  ;;  %p474_p4 = scmp.lt.u32.totalorder %s676_s6, %s787_s2 }
  0x19   : > { %p471_p6 = pnand %p470_p5, %p469_p3  ;;  %p475_p10 = scmp.lt.u32.totalorder %s473_s21, %s468_s11 }
  0x1a   : > { %p477_p12 = scmp.lt.u32.totalorder %s468_s11, %s676_s6 }
  0x1b   : > { %p472_p7 = pneg %p471_p6  ;;  %p476_p13 = por %p475_p10, %p474_p4 }
  0x1d   : > { %p478_p1 = por %p477_p12, %p476_p13 }
  0x1f   : > { %p479_p2 = pnand %p478_p1, %p472_p7 }
  0x21   : > { %482 = shalt.err (!%p479_p2)
}
  0x22   : > { %s483_s28 = scalar_lea.vmem %s678_s8, 128  ;;  %s582_s29 = smov [#allocation2]  }
  0x23   : > { %p484_p3 = scmp.ne.s32.totalorder %s678_s8, %s483_s28  ;;  %s488_s30 = sshll.u32 %s582_s29, 4  ;;  %s489_s30 = int_to_ptr.vmem [resolvable:$false] %s488_s30 }
  0x24   : > { %s490_s4 = scalar_lea.vmem %s489_s30, 256  ;;  %p491_p9 = scmp.lt.s32.totalorder %s678_s8, %s489_s30 }
  0x25   : > { %p486_p6 = pnand %p484_p3, %p470_p5  ;;  %p492_p4 = scmp.lt.s32.totalorder %s490_s4, %s483_s28 }
  0x27   : > { %p487_p11 = pneg %p486_p6  ;;  %p493_p10 = por %p492_p4, %p491_p9 }
  0x29   : > { %p494_p12 = pnand %p493_p10, %p487_p11 }
  0x2b   : > { %497 = shalt.err (!%p494_p12)
}
  0x2c   : > { %409 = dma.hbm_to_vmem [thread:$0]  (!%p682_p0), %s676_s6, 128, %s678_s8, %s154_s10  }
  0x2d   : > { %p795_p1 = scmp.lt.s32.totalorder %s580_s17, 3  ;;  %p796_p2 = scmp.ge.s32.totalorder %s580_s17, 1 }
  0x2f   : > { %p171_p5 = pnand %p796_p2, %p795_p1 }
  0x30   : > { %s718_s5 = sand.u32 (!%p171_p5), 1, %s564_s13  }
  0x31   : > { %174 = sbr.rel (%p171_p5) target bundleno = 288 (0x120), region = 32  ;;  %s388_s7 = sshll.u32 (!%p171_p5), %s718_s5, 3 }
  0x32   : > { %s177_s11 = scalar_lea.sflag (!%p171_p5), [#allocation3], %s718_s5  ;;  %s180_s18 = scalar_lea.vmem (!%p171_p5), [#allocation2], %s388_s7 }
  0x38   : > { %551 = dma.done.wait (%p654_p8), %s177_s11, 128  }
  0x39   : > { %553 = vsyncadd (%p654_p8), %s177_s11, 4294967168  ;;  %v583_v0 = vmov 0.0   ;;  %vm584_vm0 = vmmov 0   ;;  %v585_v1 = vmov 0   ;;  %vm211_vm1 = vcmask 64512   ;;  %v204_v2 = vld [vmem:[%s180_s18] sm:$0xff] }
  0x3a   : > { %397 = vmatprep.subr.mxu0 %v583_v0  ;;  %399 = vmatprep.mubr.msk.f32.mxu0 %vm584_vm0, %v583_v0  ;;  %v203_v3 = vld [vmem:[%s785_s0] sm:$0xff]  ;;  %s392_s24 = sshll.u32 %s572_s15, 7  ;;  %s202_s19 = scalar_lea.vmem [#allocation5], %s388_s7 }
  0x3b   : > { %467 = vset.pattern.permute.xlu0 %v585_v1  ;;  %v205_v4 = vld [vmem:[%s786_s1] sm:$0xff]  ;;  %398 = vmatpush3.msra.mxu0 %v204_v2  ;;  %s301_s21 = sshll.u32 %s202_s19, 4  ;;  %s736_s28 = scalar_lea.hbm %s788_s3, %s392_s24  ;;  %s738_s21 = int_to_ptr.vmem [resolvable:$true] %s301_s21 }
  0x3c   : > { %208 = vperm.xlu0 %467, %v205_v4   ;;  %400 = vmatmul.mubr.msk.f32.vlgmr.msra.gmra.mrb[0].mxu0 %vm211_vm1, %v203_v3  ;;  %s287_s29 = scalar_lea.sflag [#allocation4], %s718_s5  ;;  %s498_s30 = scalar_lea.vmem %s738_s21, 128 }
  0x3d   : > { %p499_p8 = scmp.ne.s32.totalorder %s738_s21, %s498_s30  ;;  %p797_p9 = scmp.ne.s32.totalorder %s792_s25, 0 }
  0x3e   : > { %s586_s15 = smov [#allocation5]  }
  0x3f   : > { %p500_p11 = pnand %p499_p8, %p797_p9  ;;  %s502_s4 = sshll.u32 %s586_s15, 4  ;;  %s503_s4 = int_to_ptr.vmem [resolvable:$false] %s502_s4 }
  0x40   : > { %s504_s7 = scalar_lea.vmem %s503_s4, 256  ;;  %p505_p7 = scmp.lt.s32.totalorder %s738_s21, %s503_s4 }
  0x41   : > { %p501_p0 = pneg %p500_p11  ;;  %p506_p13 = scmp.lt.s32.totalorder %s504_s7, %s498_s30 }
  0x43   : > { %p507_p3 = por %p506_p13, %p505_p7 }
  0x45   : > { %p508_p6 = pnand %p507_p3, %p501_p0 }
  0xbb   : > { %v209_v5 = vpop.permute.xlu0 %208 }
 0x10f   : > { %v281_v6 = vpop.f32.mrb[0].mxu0 }
 0x110   : > { %v282_v7 = vadd.f32 %v281_v6, %v209_v5  ;;  %v401_v8 = vpop.f32.mrb[1].mxu0 }
 0x112   : > { %285 = vst [vmem:[%s202_s19] sm:$0xff] %v282_v7 }
 0x113   : > { %511 = shalt.err (!%p508_p6)
}
 0x114   : > { %s512_s5 = scalar_lea.hbm %s736_s28, 128  ;;  %s516_s6 = scalar_lea.hbm %s788_s3, 256 }
 0x115   : > { %p513_p4 = scmp.ne.s32.totalorder %s736_s28, %s512_s5  ;;  %p517_p1 = scmp.lt.u32.totalorder %s736_s28, %s788_s3 }
 0x116   : > { %p518_p2 = scmp.lt.u32.totalorder %s516_s6, %s512_s5  ;;  %p520_p8 = scmp.lt.u32.totalorder %s512_s5, %s736_s28 }
 0x117   : > { %p514_p10 = pnand %p513_p4, %p797_p9 }
 0x118   : > { %p519_p5 = por %p518_p2, %p517_p1 }
 0x119   : > { %p515_p12 = pneg %p514_p10 }
 0x11a   : > { %p521_p11 = por %p520_p8, %p519_p5 }
 0x11c   : > { %p522_p0 = pnand %p521_p11, %p515_p12 }
 0x11e   : > { %525 = shalt.err (!%p522_p0)
}
 0x11f   : > { %404 = dma.vmem_to_hbm [thread:$0]  (%p797_p9), %s738_s21, 128, %s736_s28, %s287_s29  }
 0x120 PF: > { %s313_s10 = sand.u32 1, %s560_s12   ;;  %p798_p7 = scmp.ne.s32.totalorder %s793_s27, 0 }
 0x121   : > { %p799_p13 = scmp.ge.s32.totalorder %s580_s17, 2  ;;  %s314_s24 = scalar_lea.sflag [#allocation4], %s313_s10 }
 0x123   : > { %p411_p3 = pnand %p799_p13, %p798_p7 }
 0x125   : > { %555 = dma.done.wait (!%p411_p3), %s314_s24, 128  }
 0x126   : > { %557 = vsyncadd (!%p411_p3), %s314_s24, 4294967168  ;;  %s19_s17 = sadd.s32 1, %s580_s17   ;;  %s800_s12 = smov %s564_s13 }
 0x127   : > { %p16_p6 = scmp.ge.s32.totalorder %s19_s17, 4   ;;  %s801_s13 = smov %s568_s14 }
 0x128   : > { %s802_s14 = smov %s663_s26  ;;  %s803_s15 = smov %s576_s16 }
 0x129   : > { %s804_s16 = smov %s806_s20  ;;  %18 = sbr.rel (!%p16_p6) target bundleno = 6 (0x6), region = 77 }
 0x130   :  { %319 = vsyncpa [#allocation3], 1 }
 0x131   :  { %321 = vsyncpa [#allocation3 + $0x1], 1 }
 0x132   :  { %322 = vsyncpa [#allocation4], 1 }
 0x133   :  { %324 = vsyncpa [#allocation4 + $0x1], 1 }

</bundles_post_ra>
